<compile_context>
chip_gen: v7x
topology: tpu7x:2x2x1
jax: 0.10.0
libtpu: 0.0.40
codegen_flags: <defaults>
</compile_context>

<pallas_src>
import jax
import jax.numpy as jnp
from jax.experimental import pallas as pl
from jax.experimental.pallas import tpu as pltpu

LANE = 128
MAX_LANE_BLOCK = 8192                 # 2048-8192 lanes per grid step
VMEM_TILE_BUDGET = 16 * 1024 * 1024   # safe on v7x 64 MiB / v6e 128 MiB / v5e 128 MiB


# ----------------------------------------------------------------------------
# Pallas kernel: per-ray absorption/emission compositing (reverse marching)
# ----------------------------------------------------------------------------
def _raymarch_kernel(dens_ref, fsum_ref, gray_ref):
    # dens_ref / fsum_ref : (P, L)  ray samples, near -> far along sublanes
    # gray_ref            : (1, L)  grayscale mean of the RGBA composite
    P, L = dens_ref.shape
    eps = 1e-10  # pytorch3d EmissionAbsorptionRaymarcher shifted-cumprod eps

    trans = jnp.ones((1, L), jnp.float32)
    acc = jnp.zeros((1, L), jnp.float32)
    prod1m = jnp.ones((1, L), jnp.float32)

    # AbsorptionEmission = emission-absorption over reversed samples: march the
    # rows far -> near in-kernel instead of flipping arrays in HBM.
    # P is small and static -> fully unrolled; each row is a cheap static-slice
    # VMEM load (1, L), keeping vreg pressure at ~5 live rows.
    for k in range(P - 1, -1, -1):
        d = dens_ref[k:k + 1, :]                  # (1, L) static slice load
        fs = fsum_ref[k:k + 1, :]                 # sum of the 3 feature chans
        acc = acc + (d * trans) * fs              # shifted-cumprod weights
        trans = trans * (1.0 + eps - d)
        prod1m = prod1m * (1.0 - d)

    opacity = 1.0 - prod1m                        # alpha channel
    gray_ref[...] = (acc + opacity) * 0.25        # mean over (R, G, B, A)


def _choose_lane_block(n_lanes, n_pts):
    # double-buffered f32 inputs (2 arrays x 2 buffers x P rows) + gray output
    per_lane_bytes = 2 * 2 * n_pts * 4 + 2 * 4
    cap = (VMEM_TILE_BUDGET // per_lane_bytes) // LANE * LANE
    cap = max(LANE, min(cap, MAX_LANE_BLOCK))
    n_pad = -(-n_lanes // LANE) * LANE
    return min(cap, n_pad)


def raymarch_pallas(dens, fsum):
    P, N = dens.shape
    L = _choose_lane_block(N, P)
    N_pad = -(-N // L) * L
    if N_pad != N:
        pad = ((0, 0), (0, N_pad - N))
        dens = jnp.pad(dens, pad)
        fsum = jnp.pad(fsum, pad)

    gray = pl.pallas_call(
        _raymarch_kernel,
        out_shape=jax.ShapeDtypeStruct((1, N_pad), jnp.float32),
        grid=(N_pad // L,),
        in_specs=[pl.BlockSpec((P, L), lambda i: (0, i)),
                  pl.BlockSpec((P, L), lambda i: (0, i))],
        out_specs=pl.BlockSpec((1, L), lambda i: (0, i)),
        compiler_params=pltpu.CompilerParams(
            dimension_semantics=("parallel",),          # megacore-shardable
            vmem_limit_bytes=32 * 1024 * 1024),         # above v5e 16 MiB default
    )(dens.astype(jnp.float32), fsum.astype(jnp.float32))
    return gray[:, :N]


# ----------------------------------------------------------------------------
# Plain-JAX glue: trilinear volume sampling (grid_sample equivalent, gather)
# ----------------------------------------------------------------------------
def trilinear_sample(vol, coords):
    # vol:    (C, D, Hv, Wv)
    # coords: (..., 3) in [-1, 1], x -> Wv, y -> Hv, z -> D (align_corners=True,
    #         zero padding) — matches torch.nn.functional.grid_sample semantics.
    C, D, Hv, Wv = vol.shape
    ix = (coords[..., 0] + 1.0) * 0.5 * (Wv - 1)
    iy = (coords[..., 1] + 1.0) * 0.5 * (Hv - 1)
    iz = (coords[..., 2] + 1.0) * 0.5 * (D - 1)
    x0, y0, z0 = jnp.floor(ix), jnp.floor(iy), jnp.floor(iz)
    out = jnp.zeros((C,) + coords.shape[:-1], vol.dtype)
    for dz in (0, 1):
        for dy in (0, 1):
            for dx in (0, 1):
                xi, yi, zi = x0 + dx, y0 + dy, z0 + dz
                w = ((1.0 - jnp.abs(ix - xi)) * (1.0 - jnp.abs(iy - yi))
                     * (1.0 - jnp.abs(iz - zi)))
                valid = ((xi >= 0) & (xi <= Wv - 1) & (yi >= 0) & (yi <= Hv - 1)
                         & (zi >= 0) & (zi <= D - 1))
                xc = jnp.clip(xi, 0, Wv - 1).astype(jnp.int32)
                yc = jnp.clip(yi, 0, Hv - 1).astype(jnp.int32)
                zc = jnp.clip(zi, 0, D - 1).astype(jnp.int32)
                vals = vol[:, zc, yc, xc]                     # (C, ...)
                out = out + vals * (w * valid)[None]
    return out


# ----------------------------------------------------------------------------
# Full forward (ReverseXRayVolumeRenderer.forward, norm_type='minimized',
# is_grayscale=True, opacity given, scaling_factor=1)
# ----------------------------------------------------------------------------
def reverse_xray_volume_renderer(image3d, R, T, opacity=None,
                                 image_width=16, image_height=16,
                                 n_pts_per_ray=8, min_depth=3.0, max_depth=9.0,
                                 ndc_extent=1.0, scaling_factor=1.0):
    B, C_in = image3d.shape[0], image3d.shape[1]
    if opacity is None:
        densities = jnp.ones_like(image3d[:, :1]) * scaling_factor
    else:
        densities = opacity * scaling_factor                    # (B,1,D,H,W)
    shape = max(image3d.shape[1], image3d.shape[2])
    voxel_size = 2.0 * float(ndc_extent) / shape

    H, W, P = image_height, image_width, n_pts_per_ray

    # --- ray generation (NDC grid, half-pixel centers, linspace depths),
    #     built P-major so the kernel receives its natural (P, N) layout. -----
    # TODO(synk): pytorch3d NDCMultinomialRaysampler + camera unprojection is
    # approximated with an orthographic (R, T) camera model.
    xs = jnp.linspace(1.0 - 1.0 / W, -(1.0 - 1.0 / W), W, dtype=jnp.float32)
    ys = jnp.linspace(1.0 - 1.0 / H, -(1.0 - 1.0 / H), H, dtype=jnp.float32)
    depths = jnp.linspace(min_depth, max_depth, P, dtype=jnp.float32)
    xg, yg = jnp.meshgrid(xs, ys, indexing='xy')                 # (H, W)
    p_cam = jnp.stack([
        jnp.broadcast_to(xg[None], (P, H, W)),
        jnp.broadcast_to(yg[None], (P, H, W)),
        jnp.broadcast_to(depths[:, None, None], (P, H, W)),
    ], axis=-1)                                                  # (P,H,W,3)
    cam = p_cam[None] - T[:, None, None, None, :]                # (B,P,H,W,3)
    p_world = jnp.einsum('bphwj,bij->bphwi', cam, R)             # (B,P,H,W,3)

    # world -> volume local coords in [-1, 1]
    Dv, Hv, Wv = image3d.shape[2], image3d.shape[3], image3d.shape[4]
    half = jnp.array([voxel_size * (Wv - 1) / 2,
                      voxel_size * (Hv - 1) / 2,
                      voxel_size * (Dv - 1) / 2], dtype=jnp.float32)
    local = p_world / half                                       # (B,P,H,W,3)

    # --- trilinear sampling (gather, plain JAX). features = repeat(x, 3ch)
    # means fsum == 3 * sample(x) for single-channel input -> sample once. ----
    sample = jax.vmap(trilinear_sample, in_axes=(0, 0), out_axes=2)
    feat_samp = sample(image3d, local)                           # (C,P,B,H,W)
    feat_mult = 3.0 if C_in == 1 else 1.0
    fsum = feat_mult * feat_samp.sum(axis=0)                     # (P,B,H,W)
    rays_dens = sample(densities, local)[0]                      # (P,B,H,W)

    # AbsorptionEmission raymarcher: emission-absorption compositing with the
    # sample order reversed (the kernel marches far -> near itself).
    # TODO(synk): AbsorptionEmissionRaymarcher class source was not provided;
    # modeled as EmissionAbsorption over reversed ray samples.
    N = B * H * W
    dens2 = rays_dens.reshape(P, N)
    fsum2 = fsum.reshape(P, N)

    # --- Pallas hot path ------------------------------------------------------
    gray = raymarch_pallas(dens2, fsum2)                         # (1, N)

    # `minimized` normalization: trivial elementwise op, fused by XLA.
    eps = 1e-8
    normed = (gray + eps) / (jnp.max(gray) + eps)

    # reshape back; torch does permute(0,3,2,1) + mean(dim=1, keepdim=True)
    out = normed.reshape(B, H, W)
    out = jnp.transpose(out, (0, 2, 1))[:, None]                 # (B,1,W,H)
    return out


if __name__ == "__main__":
    key = jax.random.PRNGKey(0)
    k1, k2 = jax.random.split(key)
    B, Dv, Hv, Wv = 2, 16, 16, 16
    image3d = jax.random.uniform(k1, (B, 1, Dv, Hv, Wv), jnp.float32)
    opacity = jax.random.uniform(k2, (B, 1, Dv, Hv, Wv), jnp.float32)

    # cameras: world-to-view rotation R and translation T (pytorch3d convention)
    angle = jnp.pi / 6
    R0 = jnp.eye(3, dtype=jnp.float32)
    R1 = jnp.array([[jnp.cos(angle), 0.0, jnp.sin(angle)],
                    [0.0, 1.0, 0.0],
                    [-jnp.sin(angle), 0.0, jnp.cos(angle)]], jnp.float32)
    R = jnp.stack([R0, R1])
    T = jnp.array([[0.0, 0.0, 6.0], [0.0, 0.0, 6.0]], jnp.float32)

    out = reverse_xray_volume_renderer(
        image3d, R, T, opacity=opacity,
        image_width=16, image_height=16, n_pts_per_ray=8,
        min_depth=3.0, max_depth=9.0, ndc_extent=1.0, scaling_factor=1.0)
    out = jax.block_until_ready(out)
    assert out.shape == (B, 1, 16, 16)
    assert bool(jnp.all(jnp.isfinite(out)))
    print("KERNEL_OK")
</pallas_src>

<mosaic_0001>
module attributes {stable_mosaic.version = 11 : i64} {
  func.func @_raymarch_kernel(%arg0: i32, %arg1: memref<8x512xf32, #tpu.memory_space<vmem>>, %arg2: memref<8x512xf32, #tpu.memory_space<vmem>>, %arg3: memref<1x512xf32, #tpu.memory_space<vmem>>) attributes {dimension_semantics = [#tpu.dimension_semantics<parallel>], iteration_bounds = array<i64: 1>, scalar_prefetch = 0 : i64, scratch_operands = 0 : i64, tpu.core_type = #tpu.core_type<tc>, window_params = [{transform_indices = @transform_0, window_bounds = array<i64: 8, 512>}, {transform_indices = @transform_1, window_bounds = array<i64: 8, 512>}, {transform_indices = @transform_2, window_bounds = array<i64: 1, 512>}]} {
    %cst = arith.constant 1.000000e+00 : f32
    %0 = vector.broadcast %cst : f32 to vector<1x512xf32>
    %cst_0 = arith.constant 0.000000e+00 : f32
    %1 = vector.broadcast %cst_0 : f32 to vector<1x512xf32>
    %cst_1 = arith.constant 1.000000e+00 : f32
    %2 = vector.broadcast %cst_1 : f32 to vector<1x512xf32>
    %c7 = arith.constant 7 : index
    %c0 = arith.constant 0 : index
    %3 = vector.load %arg1[%c7, %c0] : memref<8x512xf32, #tpu.memory_space<vmem>>, vector<1x512xf32>
    %c7_2 = arith.constant 7 : index
    %c0_3 = arith.constant 0 : index
    %4 = vector.load %arg2[%c7_2, %c0_3] : memref<8x512xf32, #tpu.memory_space<vmem>>, vector<1x512xf32>
    %5 = arith.mulf %3, %0 : vector<1x512xf32>
    %6 = arith.mulf %5, %4 : vector<1x512xf32>
    %7 = arith.addf %1, %6 : vector<1x512xf32>
    %cst_4 = arith.constant 1.000000e+00 : f32
    %8 = vector.broadcast %cst_4 : f32 to vector<1x512xf32>
    %9 = arith.subf %8, %3 : vector<1x512xf32>
    %10 = arith.mulf %0, %9 : vector<1x512xf32>
    %cst_5 = arith.constant 1.000000e+00 : f32
    %11 = vector.broadcast %cst_5 : f32 to vector<1x512xf32>
    %12 = arith.subf %11, %3 : vector<1x512xf32>
    %13 = arith.mulf %2, %12 : vector<1x512xf32>
    %c6 = arith.constant 6 : index
    %c0_6 = arith.constant 0 : index
    %14 = vector.load %arg1[%c6, %c0_6] : memref<8x512xf32, #tpu.memory_space<vmem>>, vector<1x512xf32>
    %c6_7 = arith.constant 6 : index
    %c0_8 = arith.constant 0 : index
    %15 = vector.load %arg2[%c6_7, %c0_8] : memref<8x512xf32, #tpu.memory_space<vmem>>, vector<1x512xf32>
    %16 = arith.mulf %14, %10 : vector<1x512xf32>
    %17 = arith.mulf %16, %15 : vector<1x512xf32>
    %18 = arith.addf %7, %17 : vector<1x512xf32>
    %cst_9 = arith.constant 1.000000e+00 : f32
    %19 = vector.broadcast %cst_9 : f32 to vector<1x512xf32>
    %20 = arith.subf %19, %14 : vector<1x512xf32>
    %21 = arith.mulf %10, %20 : vector<1x512xf32>
    %cst_10 = arith.constant 1.000000e+00 : f32
    %22 = vector.broadcast %cst_10 : f32 to vector<1x512xf32>
    %23 = arith.subf %22, %14 : vector<1x512xf32>
    %24 = arith.mulf %13, %23 : vector<1x512xf32>
    %c5 = arith.constant 5 : index
    %c0_11 = arith.constant 0 : index
    %25 = vector.load %arg1[%c5, %c0_11] : memref<8x512xf32, #tpu.memory_space<vmem>>, vector<1x512xf32>
    %c5_12 = arith.constant 5 : index
    %c0_13 = arith.constant 0 : index
    %26 = vector.load %arg2[%c5_12, %c0_13] : memref<8x512xf32, #tpu.memory_space<vmem>>, vector<1x512xf32>
    %27 = arith.mulf %25, %21 : vector<1x512xf32>
    %28 = arith.mulf %27, %26 : vector<1x512xf32>
    %29 = arith.addf %18, %28 : vector<1x512xf32>
    %cst_14 = arith.constant 1.000000e+00 : f32
    %30 = vector.broadcast %cst_14 : f32 to vector<1x512xf32>
    %31 = arith.subf %30, %25 : vector<1x512xf32>
    %32 = arith.mulf %21, %31 : vector<1x512xf32>
    %cst_15 = arith.constant 1.000000e+00 : f32
    %33 = vector.broadcast %cst_15 : f32 to vector<1x512xf32>
    %34 = arith.subf %33, %25 : vector<1x512xf32>
    %35 = arith.mulf %24, %34 : vector<1x512xf32>
    %c4 = arith.constant 4 : index
    %c0_16 = arith.constant 0 : index
    %36 = vector.load %arg1[%c4, %c0_16] : memref<8x512xf32, #tpu.memory_space<vmem>>, vector<1x512xf32>
    %c4_17 = arith.constant 4 : index
    %c0_18 = arith.constant 0 : index
    %37 = vector.load %arg2[%c4_17, %c0_18] : memref<8x512xf32, #tpu.memory_space<vmem>>, vector<1x512xf32>
    %38 = arith.mulf %36, %32 : vector<1x512xf32>
    %39 = arith.mulf %38, %37 : vector<1x512xf32>
    %40 = arith.addf %29, %39 : vector<1x512xf32>
    %cst_19 = arith.constant 1.000000e+00 : f32
    %41 = vector.broadcast %cst_19 : f32 to vector<1x512xf32>
    %42 = arith.subf %41, %36 : vector<1x512xf32>
    %43 = arith.mulf %32, %42 : vector<1x512xf32>
    %cst_20 = arith.constant 1.000000e+00 : f32
    %44 = vector.broadcast %cst_20 : f32 to vector<1x512xf32>
    %45 = arith.subf %44, %36 : vector<1x512xf32>
    %46 = arith.mulf %35, %45 : vector<1x512xf32>
    %c3 = arith.constant 3 : index
    %c0_21 = arith.constant 0 : index
    %47 = vector.load %arg1[%c3, %c0_21] : memref<8x512xf32, #tpu.memory_space<vmem>>, vector<1x512xf32>
    %c3_22 = arith.constant 3 : index
    %c0_23 = arith.constant 0 : index
    %48 = vector.load %arg2[%c3_22, %c0_23] : memref<8x512xf32, #tpu.memory_space<vmem>>, vector<1x512xf32>
    %49 = arith.mulf %47, %43 : vector<1x512xf32>
    %50 = arith.mulf %49, %48 : vector<1x512xf32>
    %51 = arith.addf %40, %50 : vector<1x512xf32>
    %cst_24 = arith.constant 1.000000e+00 : f32
    %52 = vector.broadcast %cst_24 : f32 to vector<1x512xf32>
    %53 = arith.subf %52, %47 : vector<1x512xf32>
    %54 = arith.mulf %43, %53 : vector<1x512xf32>
    %cst_25 = arith.constant 1.000000e+00 : f32
    %55 = vector.broadcast %cst_25 : f32 to vector<1x512xf32>
    %56 = arith.subf %55, %47 : vector<1x512xf32>
    %57 = arith.mulf %46, %56 : vector<1x512xf32>
    %c2 = arith.constant 2 : index
    %c0_26 = arith.constant 0 : index
    %58 = vector.load %arg1[%c2, %c0_26] : memref<8x512xf32, #tpu.memory_space<vmem>>, vector<1x512xf32>
    %c2_27 = arith.constant 2 : index
    %c0_28 = arith.constant 0 : index
    %59 = vector.load %arg2[%c2_27, %c0_28] : memref<8x512xf32, #tpu.memory_space<vmem>>, vector<1x512xf32>
    %60 = arith.mulf %58, %54 : vector<1x512xf32>
    %61 = arith.mulf %60, %59 : vector<1x512xf32>
    %62 = arith.addf %51, %61 : vector<1x512xf32>
    %cst_29 = arith.constant 1.000000e+00 : f32
    %63 = vector.broadcast %cst_29 : f32 to vector<1x512xf32>
    %64 = arith.subf %63, %58 : vector<1x512xf32>
    %65 = arith.mulf %54, %64 : vector<1x512xf32>
    %cst_30 = arith.constant 1.000000e+00 : f32
    %66 = vector.broadcast %cst_30 : f32 to vector<1x512xf32>
    %67 = arith.subf %66, %58 : vector<1x512xf32>
    %68 = arith.mulf %57, %67 : vector<1x512xf32>
    %c1 = arith.constant 1 : index
    %c0_31 = arith.constant 0 : index
    %69 = vector.load %arg1[%c1, %c0_31] : memref<8x512xf32, #tpu.memory_space<vmem>>, vector<1x512xf32>
    %c1_32 = arith.constant 1 : index
    %c0_33 = arith.constant 0 : index
    %70 = vector.load %arg2[%c1_32, %c0_33] : memref<8x512xf32, #tpu.memory_space<vmem>>, vector<1x512xf32>
    %71 = arith.mulf %69, %65 : vector<1x512xf32>
    %72 = arith.mulf %71, %70 : vector<1x512xf32>
    %73 = arith.addf %62, %72 : vector<1x512xf32>
    %cst_34 = arith.constant 1.000000e+00 : f32
    %74 = vector.broadcast %cst_34 : f32 to vector<1x512xf32>
    %75 = arith.subf %74, %69 : vector<1x512xf32>
    %76 = arith.mulf %65, %75 : vector<1x512xf32>
    %cst_35 = arith.constant 1.000000e+00 : f32
    %77 = vector.broadcast %cst_35 : f32 to vector<1x512xf32>
    %78 = arith.subf %77, %69 : vector<1x512xf32>
    %79 = arith.mulf %68, %78 : vector<1x512xf32>
    %c0_36 = arith.constant 0 : index
    %c0_37 = arith.constant 0 : index
    %80 = vector.load %arg1[%c0_36, %c0_37] : memref<8x512xf32, #tpu.memory_space<vmem>>, vector<1x512xf32>
    %c0_38 = arith.constant 0 : index
    %c0_39 = arith.constant 0 : index
    %81 = vector.load %arg2[%c0_38, %c0_39] : memref<8x512xf32, #tpu.memory_space<vmem>>, vector<1x512xf32>
    %82 = arith.mulf %80, %76 : vector<1x512xf32>
    %83 = arith.mulf %82, %81 : vector<1x512xf32>
    %84 = arith.addf %73, %83 : vector<1x512xf32>
    %cst_40 = arith.constant 1.000000e+00 : f32
    %85 = vector.broadcast %cst_40 : f32 to vector<1x512xf32>
    %86 = arith.subf %85, %80 : vector<1x512xf32>
    %87 = arith.mulf %79, %86 : vector<1x512xf32>
    %cst_41 = arith.constant 1.000000e+00 : f32
    %88 = vector.broadcast %cst_41 : f32 to vector<1x512xf32>
    %89 = arith.subf %88, %87 : vector<1x512xf32>
    %90 = arith.addf %84, %89 : vector<1x512xf32>
    %cst_42 = arith.constant 2.500000e-01 : f32
    %91 = vector.broadcast %cst_42 : f32 to vector<1x512xf32>
    %92 = arith.mulf %90, %91 : vector<1x512xf32>
    %c0_43 = arith.constant 0 : index
    %c0_44 = arith.constant 0 : index
    %93 = vector.load %arg3[%c0_43, %c0_44] : memref<1x512xf32, #tpu.memory_space<vmem>>, vector<1x512xf32>
    tpu.vector_store %arg3[%c0_43, %c0_44], %92 {strides = array<i32>} : memref<1x512xf32, #tpu.memory_space<vmem>>, vector<1x512xf32>,
    return
  }
  func.func @transform_0(%arg0: i32) -> (i32, i32) {
    %c0_i32 = arith.constant 0 : i32
    %c0_i32_0 = arith.constant 0 : i32
    return %c0_i32, %arg0 : i32, i32
  }
  func.func @transform_1(%arg0: i32) -> (i32, i32) {
    %c0_i32 = arith.constant 0 : i32
    %c0_i32_0 = arith.constant 0 : i32
    return %c0_i32, %arg0 : i32, i32
  }
  func.func @transform_2(%arg0: i32) -> (i32, i32) {
    %c0_i32 = arith.constant 0 : i32
    %c0_i32_0 = arith.constant 0 : i32
    return %c0_i32, %arg0 : i32, i32
  }
}

</mosaic_0001>

<bundles_post_ra>
// kernel: tpu_custom_call.1
= control target key start
LH: loop header
LB: loop body
LE: loop exit
PB: predicated region body
PF: predicated region fallthrough
CT: control target
= control target key end

     0   :  { %7 = vsyncpa [#allocation3], 0  ;;  %s257_s0 = inlined_call_operand.hbm [shape: f32[8,512], index: 0, kind: input, shape index: {}]   ;;  %s258_s1 = inlined_call_operand.hbm [shape: f32[8,512], index: 1, kind: input, shape index: {}]   ;;  %s259_s2 = inlined_call_operand.hbm [shape: f32[1,512], index: 2, kind: output, shape index: {}]  }
   0x1   :  { %8 = vsyncpa [#allocation6], 0 }
   0x2   :  { %9 = vsyncpa [#allocation4], 0  ;;  %s203_s9 = smov [#allocation2]   ;;  %s204_s11 = smov [#allocation5]  }
   0x3   :  { %s16_s10 = sshll.u32 %s203_s9, 4  ;;  %s26_s12 = sshll.u32 %s204_s11, 4  ;;  %s17_s10 = int_to_ptr.vmem [resolvable:$true] %s16_s10  ;;  %s27_s12 = int_to_ptr.vmem [resolvable:$true] %s26_s12 }
   0x4   :  { %s131_s15 = scalar_lea.hbm %s257_s0, 512 }
   0x5   :  { %p132_p0 = scmp.ne.s32.totalorder %s257_s0, %s131_s15  ;;  %p135_p1 = scmp.lt.u32.totalorder %s131_s15, %s257_s0 }
   0x7   :  { %p137_p2 = pnand %p135_p1, %p132_p0 }
   0x9   :  { %140 = shalt.err (!%p137_p2)
}
   0xa   :  { %s141_s20 = scalar_lea.vmem %s17_s10, 512  ;;  %p146_p4 = scmp.lt.s32.totalorder %s17_s10, %s17_s10 }
   0xb   :  { %p142_p3 = scmp.ne.s32.totalorder %s17_s10, %s141_s20  ;;  %p147_p5 = scmp.lt.s32.totalorder %s141_s20, %s141_s20 }
   0xd   :  { %p148_p6 = por %p147_p5, %p146_p4 }
   0xf   :  { %p149_p7 = pnand %p148_p6, %p142_p3 }
  0x11   :  { %152 = shalt.err (!%p149_p7)
}
  0x12   :  { %19 = dma.hbm_to_vmem [thread:$0]  %s257_s0, 512, %s17_s10, [#allocation3]  }
  0x13   :  { %s153_s25 = scalar_lea.hbm %s258_s1, 512 }
  0x14   :  { %p154_p8 = scmp.ne.s32.totalorder %s258_s1, %s153_s25  ;;  %p157_p9 = scmp.lt.u32.totalorder %s153_s25, %s258_s1 }
  0x16   :  { %p159_p10 = pnand %p157_p9, %p154_p8 }
  0x18   :  { %162 = shalt.err (!%p159_p10)
}
  0x19   :  { %s163_s30 = scalar_lea.vmem %s27_s12, 512  ;;  %p168_p12 = scmp.lt.s32.totalorder %s27_s12, %s27_s12 }
  0x1a   :  { %p164_p11 = scmp.ne.s32.totalorder %s27_s12, %s163_s30  ;;  %p169_p13 = scmp.lt.s32.totalorder %s163_s30, %s163_s30 }
  0x1c   :  { %p170_p0 = por %p169_p13, %p168_p12 }
  0x1e   :  { %p171_p1 = pnand %p170_p0, %p164_p11 }
  0x20   :  { %174 = shalt.err (!%p171_p1)
}
  0x21   :  { %29 = dma.hbm_to_vmem [thread:$0]  %s258_s1, 512, %s27_s12, [#allocation6]  }
  0x22   :  { %197 = dma.done.wait [#allocation3], 512  }
  0x23   :  { %198 = vsyncadd [#allocation3], 4294966784 }
  0x24   :  { %199 = dma.done.wait [#allocation6], 512  }
  0x25   :  { %200 = vsyncadd [#allocation6], 4294966784  ;;  %v37_v0 = vld [vmem:[#allocation2 + $0x7] ss:$8 sm:$0xf]  ;;  %v107_v53 = vlaneseq  ;;  %s205_s1 = smov [#allocation7]  }
  0x26   :  { %v39_v1 = vld [vmem:[#allocation5 + $0x7] ss:$8 sm:$0xf]  ;;  %v42_v2 = vsub.f32 1.0, %v37_v0  ;;  %s118_s4 = sshll.u32 %s205_s1, 4  ;;  %s119_s4 = int_to_ptr.vmem [resolvable:$true] %s118_s4 }
  0x27   :  { %v44_v3 = vld [vmem:[#allocation2 + $0x6] ss:$8 sm:$0xf]  ;;  %v40_v6 = vmul.f32 %v39_v1, %v37_v0  ;;  %v53_v8 = vld [vmem:[#allocation2 + $0x5] ss:$8 sm:$0xf]  ;;  %p180_p3 = scmp.lt.s32.totalorder %s119_s4, %s119_s4 }
  0x28   :  { %v46_v4 = vld [vmem:[#allocation5 + $0x6] ss:$8 sm:$0xf]  ;;  %v50_v5 = vsub.f32 1.0, %v44_v3  ;;  %v47_v7 = vmul.f32 %v44_v3, %v42_v2  ;;  %v59_v10 = vsub.f32 1.0, %v53_v8  ;;  %vm109_vm0 = vcmp.lt.s32.totalorder %v107_v53, 512 }
  0x29   :  { %v62_v11 = vld [vmem:[#allocation2 + $0x4] ss:$8 sm:$0xf]  ;;  %v55_v13 = vld [vmem:[#allocation5 + $0x5] ss:$8 sm:$0xf] }
  0x2a   :  { %v51_v9 = vmul.f32 %v50_v5, %v42_v2  ;;  %v48_v12 = vmul.f32 %v47_v7, %v46_v4  ;;  %v68_v14 = vsub.f32 1.0, %v62_v11  ;;  %v64_v17 = vld [vmem:[#allocation5 + $0x4] ss:$8 sm:$0xf]  ;;  %s175_s5 = scalar_lea.vmem %s119_s4, 64 }
  0x2b   :  { %v71_v18 = vld [vmem:[#allocation2 + $0x3] ss:$8 sm:$0xf]  ;;  %v80_v21 = vld [vmem:[#allocation2 + $0x2] ss:$8 sm:$0xf]  ;;  %p176_p2 = scmp.ne.s32.totalorder %s119_s4, %s175_s5  ;;  %p181_p4 = scmp.lt.s32.totalorder %s175_s5, %s175_s5 }
  0x2c   :  { %v56_v15 = vmul.f32 %v53_v8, %v51_v9  ;;  %v60_v16 = vmul.f32 %v59_v10, %v51_v9  ;;  %v49_v19 = vadd.f32 %v48_v12, %v40_v6  ;;  %v77_v20 = vsub.f32 1.0, %v71_v18  ;;  %v73_v26 = vld [vmem:[#allocation5 + $0x3] ss:$8 sm:$0xf] }
  0x2d   :  { %v86_v25 = vsub.f32 1.0, %v80_v21  ;;  %v89_v27 = vld [vmem:[#allocation2 + $0x1] ss:$8 sm:$0xf]  ;;  %p182_p5 = por %p181_p4, %p180_p3 }
  0x2e   :  { %v57_v22 = vmul.f32 %v56_v15, %v55_v13  ;;  %v65_v23 = vmul.f32 %v62_v11, %v60_v16  ;;  %v69_v24 = vmul.f32 %v68_v14, %v60_v16  ;;  %v97_v32 = vld [vmem:[#allocation2] ss:$8 sm:$0xf]  ;;  %v82_v33 = vld [vmem:[#allocation5 + $0x2] ss:$8 sm:$0xf] }
  0x2f   :  { %v95_v34 = vsub.f32 1.0, %v89_v27  ;;  %v102_v35 = vsub.f32 1.0, %v97_v32  ;;  %v91_v40 = vld [vmem:[#allocation5 + $0x1] ss:$8 sm:$0xf]  ;;  %p183_p6 = pnand %p182_p5, %p176_p2 }
  0x30   :  { %v58_v28 = vadd.f32 %v57_v22, %v49_v19  ;;  %v66_v29 = vmul.f32 %v65_v23, %v64_v17  ;;  %v74_v30 = vmul.f32 %v71_v18, %v69_v24  ;;  %v78_v31 = vmul.f32 %v77_v20, %v69_v24  ;;  %v98_v45 = vld [vmem:[#allocation5] ss:$8 sm:$0xf] }
  0x32   :  { %v67_v36 = vadd.f32 %v66_v29, %v58_v28  ;;  %v75_v37 = vmul.f32 %v74_v30, %v73_v26  ;;  %v83_v38 = vmul.f32 %v80_v21, %v78_v31  ;;  %v87_v39 = vmul.f32 %v86_v25, %v78_v31 }
  0x34   :  { %v76_v41 = vadd.f32 %v75_v37, %v67_v36  ;;  %v84_v42 = vmul.f32 %v83_v38, %v82_v33  ;;  %v92_v43 = vmul.f32 %v89_v27, %v87_v39  ;;  %v96_v44 = vmul.f32 %v95_v34, %v87_v39 }
  0x36   :  { %v85_v46 = vadd.f32 %v84_v42, %v76_v41  ;;  %v93_v47 = vmul.f32 %v92_v43, %v91_v40  ;;  %v99_v48 = vmul.f32 %v97_v32, %v96_v44  ;;  %v103_v49 = vmul.f32 %v102_v35, %v96_v44 }
  0x38   :  { %v94_v50 = vadd.f32 %v93_v47, %v85_v46  ;;  %v100_v51 = vmul.f32 %v99_v48, %v98_v45  ;;  %v104_v52 = vsub.f32 1.0, %v103_v49 }
  0x3a   :  { %v101_v54 = vadd.f32 %v100_v51, %v94_v50 }
  0x3c   :  { %v105_v55 = vadd.f32 %v104_v52, %v101_v54 }
  0x3e   :  { %v106_v56 = vmul.f32 0.25, %v105_v55 }
  0x40   :  { %111 = vst.msk [vmem:[#allocation7] sm:$0xf] %vm109_vm0, %v106_v56 }
  0x41   :  { %186 = shalt.err (!%p183_p6)
}
  0x42   :  { %s187_s8 = scalar_lea.hbm %s259_s2, 64 }
  0x43   :  { %p188_p7 = scmp.ne.s32.totalorder %s259_s2, %s187_s8  ;;  %p191_p8 = scmp.lt.u32.totalorder %s187_s8, %s259_s2 }
  0x45   :  { %p193_p9 = pnand %p191_p8, %p188_p7 }
  0x47   :  { %196 = shalt.err (!%p193_p9)
}
  0x48   :  { %121 = dma.vmem_to_hbm [thread:$0]  %s119_s4, 64, %s259_s2, [#allocation4]  }
  0x49   :  { %201 = dma.done.wait [#allocation4], 64  }
  0x4a   :  { %202 = vsyncadd [#allocation4], 4294967232 }
  0x4b   :  { %125 = vsyncpa [#allocation3], 1 }
  0x4c   :  { %126 = vsyncpa [#allocation6], 1 }
  0x4d   :  { %127 = vsyncpa [#allocation4], 1 }

</bundles_post_ra>
